<compile_context>
chip_gen: v5e
topology: v5e:2x2
jax: 0.10.0
libtpu: 0.0.40
codegen_flags: <defaults>
</compile_context>

<pallas_src>
import functools

import jax
import jax.numpy as jnp
from jax.experimental import pallas as pl
from jax.experimental.pallas import tpu as pltpu


def _largest_divisor_at_most(n, cap):
    for d in range(min(n, cap), 0, -1):
        if n % d == 0:
            return d
    return 1


def _largest_aligned_divisor(n, cap, align=8):
    """Largest d <= cap with d % align == 0 and n % d == 0; else n (full-axis block)."""
    if n <= cap:
        return n
    d = (cap // align) * align
    while d >= align:
        if n % d == 0:
            return d
        d -= align
    return n  # no aligned divisor: use the full axis (block == array dim is always legal)


def _vmem_capacity_bytes():
    try:
        info = pltpu.get_tpu_info()
        cap = getattr(info, "vmem_capacity_bytes", None)
        if cap:
            return int(cap)
    except Exception:
        pass
    # Conservative fallback (valid on every generation: v7x has 64 MiB physical).
    return 64 << 20


def _sdpa_kernel(q_ref, k_ref, v_ref, out_ref, attn_ref, *, inv_temperature):
    # Blocks: q (Bt, bq, D), k (Bt, Lk, D), v (Bt, Lk, Dv).
    # Fold 1/temperature into q: scales Bt*bq*D elements instead of Bt*bq*Lk.
    q = q_ref[...] * jnp.asarray(inv_temperature, dtype=q_ref.dtype)
    k = k_ref[...]
    v = v_ref[...]

    # scores: contract on D directly (no explicit transpose), f32 MXU accumulation.
    s = jnp.einsum("bqd,bkd->bqk", q, k, preferred_element_type=jnp.float32)

    # softmax over keys (torch Softmax(dim=2)), numerically stabilized.
    m = jnp.max(s, axis=-1, keepdims=True)
    e = jnp.exp(s - m)
    denom = jnp.sum(e, axis=-1, keepdims=True)

    # Single low-precision cast: this exact array is both the returned attn matrix
    # and the LHS of the attn@v matmul (saves a full bq*Lk cast + store pass).
    # NOTE: pl.reciprocal(approx=True) -> rows sum to 1 only to ~1e-3 rel. error.
    attn_lp = (e * pl.reciprocal(denom, approx=True)).astype(v.dtype)
    attn_ref[...] = attn_lp.astype(attn_ref.dtype)  # no-op cast when dtypes match

    # output = attn @ v with f32 accumulation; single cast on writeback.
    out = jnp.einsum("bqk,bkd->bqd", attn_lp, v, preferred_element_type=jnp.float32)
    out_ref[...] = out.astype(out_ref.dtype)


def scaled_dot_product_attention(q, k, v, temperature, *, block_q=None, block_b=None):
    """q: [B, Lq, D], k: [B, Lk, D], v: [B, Lk, Dv]
    -> (output [B, Lq, Dv], attn [B, Lq, Lk]), both in q.dtype."""
    B, Lq, D = q.shape
    Bk, Lk, Dk = k.shape
    Bv, Lkv, Dv = v.shape
    assert D == Dk and Bk == B and Bv == B and Lkv == Lk

    itemsize = jnp.dtype(q.dtype).itemsize
    vmem_cap = _vmem_capacity_bytes()

    # --- q-tile size: generation / working-set aware --------------------------
    if block_q is None:
        if vmem_cap <= (64 << 20):
            # v7x-class (64 MiB VMEM): shrink the tile when the f32 softmax temps
            # (~2*bq*Lk*4 B) would dominate the budget.
            block_q = 128 if Lk >= 2048 else 256
        else:
            # v5e/v6e (128 MiB VMEM): larger tiles amortize per-step overhead.
            block_q = 512 if Lk <= 2048 else 256

    # No padding / slicing: bq divides Lq (8-aligned) or equals Lq.
    bq = _largest_aligned_divisor(Lq, block_q)
    n_q = Lq // bq

    # --- batch packing (small-sequence workloads) ------------------------------
    if block_b is None:
        block_b = 1 if (Lq >= 128 or Lk >= 512) else _largest_divisor_at_most(B, 8)
    assert B % block_b == 0
    # Keep >= 2 grid steps so both v7x TensorCores get work (and pipelining engages).
    while block_b > 1 and (B // block_b) * n_q < 2:
        block_b = _largest_divisor_at_most(B, block_b - 1)

    grid = (B // block_b, n_q)  # batch outer, Lq inner -> K/V blocks reused across i

    # --- VMEM budget (honest: inputs/outputs double-buffered + f32 temps) ------
    in_bytes = block_b * (bq * D + Lk * D + Lk * Dv) * itemsize        # q, k, v tiles
    out_bytes = block_b * (bq * Dv + bq * Lk) * itemsize               # out, attn tiles
    temp_bytes = block_b * (2 * bq * Lk + bq * D) * 4                  # f32 s, e, scaled-q
    need = 2 * (in_bytes + out_bytes) + temp_bytes + (4 << 20)
    vmem_limit = int(min(max(need, 32 << 20), int(vmem_cap * 0.78)))

    kernel = functools.partial(_sdpa_kernel, inv_temperature=1.0 / float(temperature))

    out_shapes = (
        jax.ShapeDtypeStruct((B, Lq, Dv), q.dtype),
        jax.ShapeDtypeStruct((B, Lq, Lk), q.dtype),  # attn in q.dtype (not forced f32)
    )

    cost = pl.CostEstimate(
        flops=2 * B * Lq * Lk * (D + Dv),
        transcendentals=B * Lq * Lk,
        bytes_accessed=(B * Lq * D + B * Lk * D + B * Lk * Dv
                        + B * Lq * Dv + B * Lq * Lk) * itemsize,
    )

    out, attn = pl.pallas_call(
        kernel,
        out_shape=out_shapes,
        grid_spec=pltpu.PrefetchScalarGridSpec(
            num_scalar_prefetch=0,
            grid=grid,
            in_specs=[
                pl.BlockSpec((block_b, bq, D), lambda b, i: (b, i, 0)),
                pl.BlockSpec((block_b, Lk, D), lambda b, i: (b, 0, 0)),
                pl.BlockSpec((block_b, Lk, Dv), lambda b, i: (b, 0, 0)),
            ],
            out_specs=[
                pl.BlockSpec((block_b, bq, Dv), lambda b, i: (b, i, 0)),
                pl.BlockSpec((block_b, bq, Lk), lambda b, i: (b, i, 0)),
            ],
        ),
        compiler_params=pltpu.CompilerParams(
            dimension_semantics=("parallel", "parallel"),
            vmem_limit_bytes=vmem_limit,
        ),
        cost_estimate=cost,
    )(q, k, v)

    return out, attn


if __name__ == "__main__":
    # Small deterministic example consistent with the module's bmm shapes.
    B, Lq, Lk, D, Dv = 2, 8, 8, 32, 32
    temperature = float(D) ** 0.5

    key = jax.random.PRNGKey(0)
    kq, kk, kv = jax.random.split(key, 3)
    q = jax.random.normal(kq, (B, Lq, D), dtype=jnp.float32)
    k = jax.random.normal(kk, (B, Lk, D), dtype=jnp.float32)
    v = jax.random.normal(kv, (B, Lk, Dv), dtype=jnp.float32)

    out, attn = scaled_dot_product_attention(q, k, v, temperature)
    jax.block_until_ready((out, attn))

    # Reference check (pure JAX) for correctness.
    s_ref = jnp.einsum("bqd,bkd->bqk", q, k) / temperature
    attn_ref = jax.nn.softmax(s_ref, axis=-1)
    out_ref = jnp.einsum("bqk,bkd->bqd", attn_ref, v)
    # Tolerance accounts for the approximate reciprocal (EUP vrcp) in the softmax.
    assert out.shape == (B, Lq, Dv) and attn.shape == (B, Lq, Lk)
    assert jnp.allclose(attn, attn_ref, atol=2e-3, rtol=2e-3)
    assert jnp.allclose(out, out_ref, atol=2e-3, rtol=2e-3)

    print("KERNEL_OK")
</pallas_src>

<mosaic_0001>
module attributes {stable_mosaic.version = 11 : i64} {
  func.func @_sdpa_kernel(%arg0: i32, %arg1: i32, %arg2: memref<1x8x32xf32, #tpu.memory_space<vmem>>, %arg3: memref<1x8x32xf32, #tpu.memory_space<vmem>>, %arg4: memref<1x8x32xf32, #tpu.memory_space<vmem>>, %arg5: memref<1x8x32xf32, #tpu.memory_space<vmem>>, %arg6: memref<1x8x8xf32, #tpu.memory_space<vmem>>) attributes {dimension_semantics = [#tpu.dimension_semantics<parallel>, #tpu.dimension_semantics<parallel>], iteration_bounds = array<i64: 2, 1>, scalar_prefetch = 0 : i64, scratch_operands = 0 : i64, tpu.core_type = #tpu.core_type<tc>, window_params = [{transform_indices = @transform_0, window_bounds = array<i64: 1, 8, 32>}, {transform_indices = @transform_1, window_bounds = array<i64: 1, 8, 32>}, {transform_indices = @transform_2, window_bounds = array<i64: 1, 8, 32>}, {transform_indices = @transform_3, window_bounds = array<i64: 1, 8, 32>}, {transform_indices = @transform_4, window_bounds = array<i64: 1, 8, 8>}]} {
    %c0 = arith.constant 0 : index
    %c0_0 = arith.constant 0 : index
    %c0_1 = arith.constant 0 : index
    %0 = vector.load %arg2[%c0, %c0_0, %c0_1] : memref<1x8x32xf32, #tpu.memory_space<vmem>>, vector<1x8x32xf32>
    %cst = arith.constant 0.176776692 : f32
    %1 = vector.broadcast %cst : f32 to vector<1x8x32xf32>
    %2 = arith.mulf %0, %1 : vector<1x8x32xf32>
    %c0_2 = arith.constant 0 : index
    %c0_3 = arith.constant 0 : index
    %c0_4 = arith.constant 0 : index
    %3 = vector.load %arg3[%c0_2, %c0_3, %c0_4] : memref<1x8x32xf32, #tpu.memory_space<vmem>>, vector<1x8x32xf32>
    %c0_5 = arith.constant 0 : index
    %c0_6 = arith.constant 0 : index
    %c0_7 = arith.constant 0 : index
    %4 = vector.load %arg4[%c0_5, %c0_6, %c0_7] : memref<1x8x32xf32, #tpu.memory_space<vmem>>, vector<1x8x32xf32>
    "tpu.trace_start"() <{level = 10 : i32, message = "bqd,bkd->bqk"}> : () -> ()
    %cst_8 = arith.constant dense<0.000000e+00> : vector<1x8x8xf32>
    %5 = tpu.matmul %2, %3, %cst_8 {dimension_numbers = #tpu.dot_dimension_numbers<[2], [2], [1], [1], [0, 0, 0, 1, 1, 1], [0], [0]>} : vector<1x8x32xf32>, vector<1x8x32xf32>, vector<1x8x8xf32> -> vector<1x8x8xf32>
    "tpu.trace_stop"() : () -> ()
    %cst_9 = arith.constant dense<0xFF800000> : vector<1x8xf32>
    %6 = vector.multi_reduction <maximumf>, %5, %cst_9 [2] : vector<1x8x8xf32> to vector<1x8xf32>
    %7 = vector.shape_cast %6 : vector<1x8xf32> to vector<1x8x1xf32>
    %8 = vector.broadcast %7 : vector<1x8x1xf32> to vector<1x8x8xf32>
    %9 = arith.subf %5, %8 : vector<1x8x8xf32>
    %10 = math.exp %9 : vector<1x8x8xf32>
    %cst_10 = arith.constant dense<0.000000e+00> : vector<1x8xf32>
    %11 = vector.multi_reduction <add>, %10, %cst_10 [2] : vector<1x8x8xf32> to vector<1x8xf32>
    %12 = vector.shape_cast %11 : vector<1x8xf32> to vector<1x8x1xf32>
    %13 = tpu.reciprocal %12 {approx = true} : vector<1x8x1xf32> -> vector<1x8x1xf32>
    %14 = vector.broadcast %13 : vector<1x8x1xf32> to vector<1x8x8xf32>
    %15 = arith.mulf %10, %14 : vector<1x8x8xf32>
    %c0_11 = arith.constant 0 : index
    %c0_12 = arith.constant 0 : index
    %c0_13 = arith.constant 0 : index
    %16 = vector.load %arg6[%c0_11, %c0_12, %c0_13] : memref<1x8x8xf32, #tpu.memory_space<vmem>>, vector<1x8x8xf32>
    tpu.vector_store %arg6[%c0_11, %c0_12, %c0_13], %15 {strides = array<i32>} : memref<1x8x8xf32, #tpu.memory_space<vmem>>, vector<1x8x8xf32>,
    "tpu.trace_start"() <{level = 10 : i32, message = "bqk,bkd->bqd"}> : () -> ()
    %cst_14 = arith.constant dense<0.000000e+00> : vector<1x8x32xf32>
    %17 = tpu.matmul %15, %4, %cst_14 {dimension_numbers = #tpu.dot_dimension_numbers<[2], [1], [1], [2], [0, 0, 0, 1, 1, 2], [0], [0]>} : vector<1x8x8xf32>, vector<1x8x32xf32>, vector<1x8x32xf32> -> vector<1x8x32xf32>
    "tpu.trace_stop"() : () -> ()
    %c0_15 = arith.constant 0 : index
    %c0_16 = arith.constant 0 : index
    %c0_17 = arith.constant 0 : index
    %18 = vector.load %arg5[%c0_15, %c0_16, %c0_17] : memref<1x8x32xf32, #tpu.memory_space<vmem>>, vector<1x8x32xf32>
    tpu.vector_store %arg5[%c0_15, %c0_16, %c0_17], %17 {strides = array<i32>} : memref<1x8x32xf32, #tpu.memory_space<vmem>>, vector<1x8x32xf32>,
    return
  }
  func.func @transform_0(%arg0: i32, %arg1: i32) -> (i32, i32, i32) {
    %c0_i32 = arith.constant 0 : i32
    %c0_i32_0 = arith.constant 0 : i32
    return %arg0, %arg1, %c0_i32 : i32, i32, i32
  }
  func.func @transform_1(%arg0: i32, %arg1: i32) -> (i32, i32, i32) {
    %c0_i32 = arith.constant 0 : i32
    %c0_i32_0 = arith.constant 0 : i32
    %c0_i32_1 = arith.constant 0 : i32
    return %arg0, %c0_i32, %c0_i32_0 : i32, i32, i32
  }
  func.func @transform_2(%arg0: i32, %arg1: i32) -> (i32, i32, i32) {
    %c0_i32 = arith.constant 0 : i32
    %c0_i32_0 = arith.constant 0 : i32
    %c0_i32_1 = arith.constant 0 : i32
    return %arg0, %c0_i32, %c0_i32_0 : i32, i32, i32
  }
  func.func @transform_3(%arg0: i32, %arg1: i32) -> (i32, i32, i32) {
    %c0_i32 = arith.constant 0 : i32
    %c0_i32_0 = arith.constant 0 : i32
    return %arg0, %arg1, %c0_i32 : i32, i32, i32
  }
  func.func @transform_4(%arg0: i32, %arg1: i32) -> (i32, i32, i32) {
    %c0_i32 = arith.constant 0 : i32
    %c0_i32_0 = arith.constant 0 : i32
    return %arg0, %arg1, %c0_i32 : i32, i32, i32
  }
}

</mosaic_0001>

<bundles_post_ra>
// kernel: tpu_custom_call.1
= control target key start
LH: loop header
LB: loop body
LE: loop exit
PB: predicated region body
PF: predicated region fallthrough
CT: control target
= control target key end

     0   :  { %s1103_s0 = inlined_call_operand.hbm [shape: f32[2,8,32], index: 0, kind: input, shape index: {}]   ;;  %s1104_s1 = inlined_call_operand.hbm [shape: f32[2,8,32], index: 1, kind: input, shape index: {}]   ;;  %s1105_s2 = inlined_call_operand.hbm [shape: f32[2,8,32], index: 2, kind: input, shape index: {}]   ;;  %s1106_s3 = inlined_call_operand.hbm [shape: f32[2,8,32], index: 3, kind: output, shape index: {0}]   ;;  %s1107_s4 = inlined_call_operand.hbm [shape: f32[2,8,8], index: 4, kind: output, shape index: {1}]  }
   0x1   :  { %1111 = sst [smem:[#allocation19_spill]] %s1104_s1 }
   0x2   :  { %10 = vsyncpa [#allocation3], 0 }
   0x3   :  { %12 = vsyncpa [#allocation3 + $0x1], 0 }
   0x4   :  { %13 = vsyncpa [#allocation6], 0 }
   0x5   :  { %15 = vsyncpa [#allocation6 + $0x1], 0 }
   0x6   :  { %16 = vsyncpa [#allocation4], 0 }
   0x7   :  { %18 = vsyncpa [#allocation4 + $0x1], 0 }
   0x8   :  { %19 = vsyncpa [#allocation10], 0 }
   0x9   :  { %21 = vsyncpa [#allocation10 + $0x1], 0  ;;  %s923_s15 = smov 0   ;;  %s925_s16 = smov 0  }
   0xa   :  { %s927_s17 = smov 0   ;;  %s929_s18 = smov 0  }
   0xb   :  { %s931_s19 = smov 0   ;;  %s933_s20 = smov 0  }
   0xc LB: > { %1112 = sst [smem:[#allocation15_spill]] %s884_s17  ;;  %s954_s21 = sadd.s32 4294967295, %s896_s20   ;;  %s896_s20 = sphi %s933_s20, %s27_s20   ;;  %s892_s19 = sphi %s931_s19, %s1126_s19   ;;  %s888_s18 = sphi %s929_s18, %s1125_s18   ;;  %s884_s17 = sphi %s927_s17, %s1124_s17   ;;  %s880_s16 = sphi %s925_s16, %s1128_s16   ;;  %s876_s15 = sphi %s923_s15, %s1127_s15  }
   0xd   : > { %1113 = sst [smem:[#allocation16_spill]] %s892_s19  ;;  %s583_s22 = sadd.s32 4294967294, %s896_s20  }
   0xe   : > { %s39_s23 = sadd.s32 1, %s892_s19  ;;  %s48_s24 = sadd.s32 1, %s884_s17 }
   0xf   : > { %p41_p0 = scmp.ge.s32.totalorder %s39_s23, 2  ;;  %p55_p1 = scmp.ne.s32.totalorder %s884_s17, %s880_s16 }
  0x10   : > { %p56_p2 = scmp.eq.s32.totalorder %s896_s20, 0  ;;  %p61_p3 = scmp.ne.s32.totalorder %s880_s16, %s876_s15 }
  0x11   : > { %s1130_s23 = smov (%p41_p0, %s39_s23), 0  ;;  %p62_p5 = scmp.eq.s32.totalorder %s954_s21, 0 }
  0x12   : > { %1114 = sst [smem:[#allocation17_spill]] %s1130_s23  ;;  %p966_p4 = por %p56_p2, %p55_p1 }
  0x13   : > { %s43_s26 = ssub.s32 %s892_s19, %s1130_s23  ;;  %p139_p6 = scmp.eq.s32.totalorder %s954_s21, 1 }
  0x14   : > { %p46_p7 = scmp.eq.s32.totalorder %s43_s26, 0  ;;  %p974_p8 = por %p62_p5, %p61_p3 }
  0x15   : > { %p978_p9 = por %p139_p6, %p55_p1  ;;  %p145_p10 = scmp.eq.s32.totalorder %s583_s22, 1 }
  0x16   : > { %s983_s29 = scalar_select %p46_p7, %s884_s17, %s48_s24  }
  0x17   : > { %p985_p11 = por %p145_p10, %p61_p3  ;;  %p585_p12 = scmp.ge.s32.totalorder %s896_s20, 2 }
  0x18   : > { %1118 = sst [smem:[#allocation18_spill]] %s983_s29  ;;  %p634_p13 = scmp.lt.s32.totalorder %s896_s20, 2 }
  0x19   : > { %s193_s5 = sand.u32 1, %s884_s17   ;;  %s587_s7 = sshll.u32 %s892_s19, 3 }
  0x1a   : > { %s586_s6 = sshll.u32 %s193_s5, 3  ;;  %p995_p0 = pnand %p634_p13, %p966_p4 }
  0x1b   : > { %s213_s9 = sand.u32 1, %s896_s20   ;;  %s1121_s1 = sld [smem:[#allocation19_spill]] }
  0x1c   : > { %s217_s14 = scalar_lea.vmem [#allocation5], %s586_s6  ;;  %s214_s24 = scalar_lea.sflag [#allocation6], %s213_s9 }
  0x1d   : > { %s225_s22 = sshll.u32 %s217_s14, 4  ;;  %p592_p1 = scmp.ge.s32.totalorder %s896_s20, 1  ;;  %s226_s22 = int_to_ptr.vmem [resolvable:$true] %s225_s22 }
  0x1e   : > { %p249_p2 = scmp.lt.s32.totalorder %s896_s20, 3  ;;  %s202_s10 = scalar_lea.hbm %s1103_s0, %s587_s7 }
  0x1f   : > { %s204_s11 = sshll.u32 %s202_s10, 4  ;;  %s194_s14 = scalar_lea.sflag [#allocation3], %s193_s5  ;;  %s205_s11 = int_to_ptr.hbm [resolvable:$true] %s204_s11 }
  0x20   : > { %p1007_p3 = pnand %p592_p1, %p249_p2  ;;  %s236_s29 = scalar_lea.vmem [#allocation7], %s586_s6 }
  0x21   : > { %s221_s12 = scalar_lea.hbm %s1121_s1, %s587_s7  ;;  %s244_s17 = sshll.u32 %s236_s29, 4  ;;  %s245_s17 = int_to_ptr.vmem [resolvable:$true] %s244_s17 }
  0x22   : > { %s223_s13 = sshll.u32 %s221_s12, 4  ;;  %s197_s12 = scalar_lea.vmem [#allocation2], %s586_s6  ;;  %s224_s13 = int_to_ptr.hbm [resolvable:$true] %s223_s13 }
  0x23   : > { %623 = dma.hbm_to_vmem [thread:$0]  (!%p995_p0), %s224_s13, 128, %s226_s22, %s214_s24  }
  0x24   : > { %s206_s1 = sshll.u32 %s197_s12, 4  ;;  %s240_s22 = scalar_lea.hbm %s1105_s2, %s587_s7  ;;  %s207_s1 = int_to_ptr.vmem [resolvable:$true] %s206_s1 }
  0x25   : > { %620 = dma.hbm_to_vmem [thread:$0]  (!%p995_p0), %s205_s11, 128, %s207_s1, %s194_s14  }
  0x26   : > { %s242_s19 = sshll.u32 %s240_s22, 4  ;;  %253 = sbr.rel (%p1007_p3) target bundleno = 560 (0x230), region = 32  ;;  %s243_s19 = int_to_ptr.hbm [resolvable:$true] %s242_s19 }
  0x27   : > { %626 = dma.hbm_to_vmem [thread:$0]  (!%p995_p0), %s243_s19, 128, %s245_s17, %s214_s24  }
  0x28   : > { %s1024_s23 = sand.u32 (!%p1007_p3), 1, %s880_s16  }
  0x29   : > { %s1027_s1 = sshll.u32 (!%p1007_p3), %s1024_s23, 3  ;;  %s256_s5 = scalar_lea.sflag (!%p1007_p3), [#allocation3], %s1024_s23 }
  0x2a   : > { %s259_s7 = scalar_lea.vmem (!%p1007_p3), [#allocation2], %s1027_s1 }
  0x2b   : > { %859 = dma.done.wait (%p974_p8), %s256_s5, 128  }
  0x2c   : > { %861 = vsyncadd (%p974_p8), %s256_s5, 4294967168  ;;  %s265_s17 = sand.u32 1, %s954_s21   ;;  %s269_s29 = scalar_lea.vmem [#allocation5], %s1027_s1 }
  0x2d   : > { %s266_s19 = scalar_lea.sflag [#allocation6], %s265_s17 }
  0x2e   : > { %863 = dma.done.wait (%p974_p8), %s266_s19, 256  }
  0x2f   : > { %865 = vsyncadd (%p974_p8), %s266_s19, 4294967040  ;;  %vm324_vm0 = vcmask 261120   ;;  %v322_v0 = vld [vmem:[%s269_s29] sm:$0xff]  ;;  %v320_v1 = vld [vmem:[%s259_s7] sm:$0xff]  ;;  %vm351_vm1 = vcmask 64512   ;;  %s279_s21 = scalar_lea.vmem [#allocation7], %s1027_s1 }
  0x30   : > { %598 = vmatpush.xpose.msk.msra.mxu0 %vm324_vm0, %v322_v0  ;;  %v321_v2 = vmul.f32 0.17677669, %v320_v1  ;;  %v323_v10 = vld [vmem:[%s279_s21] sm:$0xff]  ;;  %s603_s27 = sshll.u32 %s888_s18, 3  ;;  %s319_s25 = scalar_lea.vmem [#allocation9], %s1027_s1 }
  0x31   : > { %382 = vmatpush.msra.mxu1 %v323_v10  ;;  %s420_s24 = scalar_lea.hbm %s1107_s4, %s603_s27  ;;  %s422_s26 = sshll.u32 %s319_s25, 4  ;;  %s423_s26 = int_to_ptr.vmem [resolvable:$true] %s422_s26 }
  0x32   : > { %s424_s10 = sshll.u32 %s420_s24, 4  ;;  %s394_s11 = scalar_lea.sflag [#allocation10], %s1024_s23  ;;  %s425_s10 = int_to_ptr.hbm [resolvable:$true] %s424_s10 }
  0x33   : > { %599 = vmatmul.msk.f32.vlgmr.msra.gmra.mxu0 %vm324_vm0, %v321_v2  ;;  %s792_s12 = sshra.s32 %s425_s10, 4  ;;  %s798_s13 = scalar_lea.hbm %s1107_s4, 16  ;;  %s793_s12 = int_to_ptr.hbm [resolvable:$true] %s792_s12 }
  0x34   : > { %s794_s18 = scalar_lea.hbm %s793_s12, 8  ;;  %p799_p7 = scmp.lt.s32.totalorder %s793_s12, %s1107_s4 }
  0x35   : > { %p795_p4 = scmp.ne.s32.totalorder %s793_s12, %s794_s18  ;;  %p800_p8 = scmp.lt.s32.totalorder %s798_s13, %s794_s18 }
  0x37   : > { %p796_p5 = pnand %p795_p4, %p978_p9  ;;  %p801_p10 = por %p800_p8, %p799_p7 }
  0x39   : > { %p797_p6 = pneg %p796_p5 }
  0x3b   : > { %p802_p13 = pnand %p801_p10, %p797_p6 }
  0xb0   : > { %v348_v3 = vpop.f32.mrf.mxu0 }
  0xb1   : > { %v352_v4 = vsel %vm351_vm1, %v348_v3, -inf }
  0xb2   : > { %353 = vmax.xlane.f32.xlu0 %v352_v4 }
 0x125   : > { %v354_v5 = vpop.xlane.xlu0 %353 }
 0x126   : > { %v355_v6 = vsub.f32 %v348_v3, %v354_v5 }
 0x128   : > { %v356_v7 = vmul.f32 1.442695, %v355_v6 }
 0x12a   : > { %684 = vpow2.f32 %v356_v7 }
 0x130   : > { %v685_v8 = vpop.eup %684 }
 0x131   : > { %v358_v9 = vsel %vm351_vm1, %v685_v8, 0.0 }
 0x132   : > { %359 = vadd.xlane.f32.xlu0 %v358_v9 }
 0x1a5   : > { %v360_v11 = vpop.xlane.xlu0 %359 }
 0x1a6   : > { %686 = vrcp.f32 %v360_v11 }
 0x1ac   : > { %v687_v12 = vpop.eup %686 }
 0x1ad   : > { %v362_v13 = vmul.f32 %v687_v12, %v685_v8 }
 0x1af   : > { %600 = vmatmul.msk.f32.vlgmr.msra.gmra.mxu1 %vm351_vm1, %v362_v13  ;;  %363 = vst.msk [vmem:[%s319_s25] sm:$0xff] %vm351_vm1, %v362_v13 }
 0x1b0   : > { %805 = shalt.err (!%p802_p13)
}
 0x1b1   : > { %614 = dma.vmem_to_hbm [thread:$0]  (%p978_p9), %s423_s26, 128, %s425_s10, %s394_s11  }
 0x1b2   : > { %s405_s19 = scalar_lea.hbm %s1106_s3, %s603_s27  ;;  %s312_s29 = scalar_lea.vmem [#allocation8], %s1027_s1 }
 0x1b3   : > { %s407_s21 = sshll.u32 %s312_s29, 4  ;;  %s409_s6 = sshll.u32 %s405_s19, 4  ;;  %s408_s21 = int_to_ptr.vmem [resolvable:$true] %s407_s21  ;;  %s410_s6 = int_to_ptr.hbm [resolvable:$true] %s409_s6 }
 0x1b4   : > { %s389_s8 = scalar_lea.sflag [#allocation4], %s1024_s23  ;;  %s820_s24 = sshra.s32 %s410_s6, 4  ;;  %s821_s24 = int_to_ptr.hbm [resolvable:$true] %s820_s24 }
 0x1b5   : > { %s822_s25 = scalar_lea.hbm %s821_s24, 8  ;;  %s826_s27 = scalar_lea.hbm %s1106_s3, 16 }
 0x1b6   : > { %p823_p0 = scmp.ne.s32.totalorder %s821_s24, %s822_s25  ;;  %p827_p3 = scmp.lt.s32.totalorder %s821_s24, %s1106_s3 }
 0x1b7   : > { %p828_p4 = scmp.lt.s32.totalorder %s826_s27, %s822_s25 }
 0x1b8   : > { %p824_p1 = pnand %p823_p0, %p978_p9 }
 0x1b9   : > { %p829_p5 = por %p828_p4, %p827_p3 }
 0x1ba   : > { %p825_p2 = pneg %p824_p1 }
 0x1bc   : > { %p830_p6 = pnand %p829_p5, %p825_p2 }
 0x22c   : > { %v384_v14 = vpop.f32.mrf.mxu1 }
 0x22d   : > { %387 = vst.msk [vmem:[%s312_s29] sm:$0xff] %vm324_vm0, %v384_v14 }
 0x22e   : > { %833 = shalt.err (!%p830_p6)
}
 0x22f   : > { %613 = dma.vmem_to_hbm [thread:$0]  (%p978_p9), %s408_s21, 128, %s410_s6, %s389_s8  }
 0x230 PF: > { %s436_s23 = sand.u32 1, %s876_s15   ;;  %p628_p7 = pnand %p585_p12, %p985_p11 }
 0x231   : > { %s437_s12 = scalar_lea.sflag [#allocation4], %s436_s23 }
 0x232   : > { %p629_p8 = pneg %p628_p7 }
 0x234   : > { %867 = dma.done.wait (%p629_p8), %s437_s12, 128  }
 0x235   : > { %869 = vsyncadd (%p629_p8), %s437_s12, 4294967168  ;;  %s447_s18 = scalar_lea.sflag [#allocation10], %s436_s23 }
 0x236   : > { %871 = dma.done.wait (%p629_p8), %s447_s18, 128  }
 0x237   : > { %873 = vsyncadd (%p629_p8), %s447_s18, 4294967168  ;;  %s27_s20 = sadd.s32 1, %s896_s20   ;;  %s1123_s28 = sld [smem:[#allocation15_spill]] }
 0x238   : > { %p24_p10 = scmp.ge.s32.totalorder %s27_s20, 4   ;;  %s1124_s17 = sld [smem:[#allocation18_spill]] }
 0x239   : > { %s1125_s18 = sld [smem:[#allocation16_spill]]  ;;  %s1127_s15 = smov %s880_s16 }
 0x23a   : > { %s1126_s19 = sld [smem:[#allocation17_spill]]  ;;  %26 = sbr.rel (!%p24_p10) target bundleno = 12 (0xc), region = 118 }
 0x23d   : > { %s1128_s16 = smov %s1123_s28 }
 0x23f   :  { %453 = vsyncpa [#allocation3], 1 }
 0x240   :  { %455 = vsyncpa [#allocation3 + $0x1], 1 }
 0x241   :  { %456 = vsyncpa [#allocation6], 1 }
 0x242   :  { %458 = vsyncpa [#allocation6 + $0x1], 1 }
 0x243   :  { %459 = vsyncpa [#allocation4], 1 }
 0x244   :  { %461 = vsyncpa [#allocation4 + $0x1], 1 }
 0x245   :  { %462 = vsyncpa [#allocation10], 1 }
 0x246   :  { %464 = vsyncpa [#allocation10 + $0x1], 1 }

</bundles_post_ra>
